<compile_context>
chip_gen: v7x
topology: tpu7x:2x2x1
jax: 0.10.0
libtpu: 0.0.40
codegen_flags: <defaults>
</compile_context>

<pallas_src>
import jax
import jax.numpy as jnp
from jax.experimental import pallas as pl
from jax.experimental.pallas import tpu as pltpu


def _round_up(x, m):
    return ((x + m - 1) // m) * m


def homography_mlp_kernel(xt_ref, w1t_ref, b1t_ref, w2t_ref, b2t_ref,
                          w3t_ref, b3t_ref, ot_ref):
    # xt:  (in_f, tm) f32      w1t: (H, in_f) f32   b1t: (H, 1) f32
    # w2t: (H, H)  matmul_dtype                     b2t: (H, 1) f32
    # w3t: (8, H)  matmul_dtype                     b3t: (8, 1) f32
    # ot:  (8, tm) f32
    xt = xt_ref[...]
    w1t = w1t_ref[...]

    if xt.shape[0] == 1:
        # K=1 contraction is an outer product: broadcast multiply + bias on the
        # VPU instead of a 1/256-utilized MXU matmul.
        h = w1t * xt + b1t_ref[...]
    else:
        h = jnp.dot(w1t, xt, preferred_element_type=jnp.float32) + b1t_ref[...]
    h = jnp.maximum(h, 0.0)

    # Hidden 256x256 layer on the MXU, bf16 operands by default, f32 accum.
    h = jnp.dot(w2t_ref[...], h.astype(w2t_ref.dtype),
                preferred_element_type=jnp.float32) + b2t_ref[...]
    h = jnp.maximum(h, 0.0)

    out = jnp.dot(w3t_ref[...], h.astype(w3t_ref.dtype),
                  preferred_element_type=jnp.float32) + b3t_ref[...]
    ot_ref[...] = out.astype(ot_ref.dtype)


def homography_forward(coords, params, *, tile_m=2048,
                       matmul_dtype=jnp.bfloat16, vmem_limit_bytes=None):
    """coords: (N, in_features) float32. Returns (N, 8) float32.

    tile_m:       batch tile (rows per grid step), rounded to a multiple of 128.
    matmul_dtype: dtype fed to the MXU for the hidden/output matmuls
                  (bf16 default; f32 for the exact path; fp8 possible on v7x).
                  Accumulation is always f32. With bf16 expect ~1e-2 abs error.
    vmem_limit_bytes: raise the scoped-VMEM limit (needed on v5e if tile_m is
                  pushed past ~2048).
    """
    w1, b1, w2, b2, w3, b3 = params
    n, in_f = coords.shape
    hidden = w1.shape[1]
    out_f = w3.shape[1]

    # ---- feature-major weights; MXU operands cast ONCE here, not per step ----
    w1t = w1.T                              # (H, in_f) f32 (VPU / tiny-K path)
    b1t = b1.reshape(hidden, 1)
    w2t = w2.T.astype(matmul_dtype)         # (H, H)
    b2t = b2.reshape(hidden, 1)
    w3t = w3.T.astype(matmul_dtype)         # (8, H)
    b3t = b3.reshape(out_f, 1)

    # ---- batch tiling along the lane axis (multiples of 128 lanes) ----
    n128 = _round_up(max(n, 1), 128)
    tm = min(int(tile_m), n128)
    if n128 >= 256:
        # Keep >= 2 grid steps whenever there is enough work: enables
        # double-buffered pipelining and lets v7x shard the batch over both TCs.
        tm = min(tm, _round_up(pl.cdiv(n128, 2), 128))
    tm = max(128, _round_up(tm, 128))
    n_pad = _round_up(n, tm)

    xt = coords.T                           # (in_f, n); trivial for in_f == 1
    if n_pad != n:
        xt = jnp.pad(xt, ((0, 0), (0, n_pad - n)))

    flops = 2 * n_pad * hidden * (in_f + hidden + out_f)
    bytes_accessed = (
        xt.size * 4 + out_f * n_pad * 4
        + (w1t.size + b1t.size + b2t.size + b3t.size) * 4
        + (w2t.size + w3t.size) * w2t.dtype.itemsize)

    grid = (n_pad // tm,)
    out_t = pl.pallas_call(
        homography_mlp_kernel,
        out_shape=jax.ShapeDtypeStruct((out_f, n_pad), jnp.float32),
        grid_spec=pltpu.PrefetchScalarGridSpec(
            num_scalar_prefetch=0,
            grid=grid,
            in_specs=[
                pl.BlockSpec((in_f, tm), lambda i: (0, i)),
                # Constant-index weight/bias blocks: Mosaic skips the re-DMA
                # when the block index does not change between steps.
                pl.BlockSpec((hidden, in_f), lambda i: (0, 0)),
                pl.BlockSpec((hidden, 1), lambda i: (0, 0)),
                pl.BlockSpec((hidden, hidden), lambda i: (0, 0)),
                pl.BlockSpec((hidden, 1), lambda i: (0, 0)),
                pl.BlockSpec((out_f, hidden), lambda i: (0, 0)),
                pl.BlockSpec((out_f, 1), lambda i: (0, 0)),
            ],
            out_specs=pl.BlockSpec((out_f, tm), lambda i: (0, i)),
        ),
        compiler_params=pltpu.CompilerParams(
            dimension_semantics=("parallel",),
            vmem_limit_bytes=vmem_limit_bytes),
        cost_estimate=pl.CostEstimate(
            flops=flops, transcendentals=0, bytes_accessed=bytes_accessed),
    )(xt, w1t, b1t, w2t, b2t, w3t, b3t)

    # (8, n_pad) -> (N, 8): strips the batch padding; the transpose only
    # touches N*32 bytes (vs. the old 16x-padded slab).
    return out_t[:, :n].T


def init_params(key, in_features=1, hidden_features=256, hidden_layers=1):
    """Deterministic init mirroring PyTorch nn.Linear default
    (U(-1/sqrt(fan_in), 1/sqrt(fan_in))), with the last-layer bias set to the
    identity homography as in Homography.init_weights()."""
    # TODO(synk): fused kernel hardcodes the module's default depth (3 linears).
    assert hidden_layers == 1
    out_features = 8
    k1, k2, k3, k4, k5, k6 = jax.random.split(key, 6)

    def lin(kw, kb, fan_in, fan_out):
        bound = 1.0 / jnp.sqrt(fan_in)
        w = jax.random.uniform(kw, (fan_in, fan_out), jnp.float32, -bound, bound)
        b = jax.random.uniform(kb, (1, fan_out), jnp.float32, -bound, bound)
        return w, b

    w1, b1 = lin(k1, k2, in_features, hidden_features)
    w2, b2 = lin(k3, k4, hidden_features, hidden_features)
    w3, _ = lin(k5, k6, hidden_features, out_features)
    b3 = jnp.array([[1.0, 0.0, 0.0, 0.0, 1.0, 0.0, 0.0, 0.0]], jnp.float32)
    return (w1, b1, w2, b2, w3, b3)


def reference_forward(coords, params):
    w1, b1, w2, b2, w3, b3 = params
    h = jnp.maximum(coords @ w1 + b1, 0.0)
    h = jnp.maximum(h @ w2 + b2, 0.0)
    return h @ w3 + b3


if __name__ == "__main__":
    key = jax.random.PRNGKey(0)
    k_params, k_coords = jax.random.split(key)

    in_features, hidden_features = 1, 256
    params = init_params(k_params, in_features, hidden_features, hidden_layers=1)

    # --- small case (like the NIR net's time-coordinate input), exact f32 ---
    n_small = 8
    coords_small = jax.random.uniform(k_coords, (n_small, in_features),
                                      jnp.float32, -1.0, 1.0)
    out_small = jax.block_until_ready(
        homography_forward(coords_small, params, matmul_dtype=jnp.float32))
    ref_small = reference_forward(coords_small, params)
    assert out_small.shape == (n_small, 8)
    assert jnp.allclose(out_small, ref_small, atol=1e-4, rtol=1e-4)

    # --- ragged batch -> padding + multi-step grid (>= 2 steps) ---
    n_big = 1000
    coords_big = jax.random.uniform(jax.random.PRNGKey(1), (n_big, in_features),
                                    jnp.float32, -1.0, 1.0)
    ref_big = reference_forward(coords_big, params)

    out_f32 = jax.block_until_ready(
        homography_forward(coords_big, params, matmul_dtype=jnp.float32))
    assert out_f32.shape == (n_big, 8)
    assert jnp.allclose(out_f32, ref_big, atol=1e-4, rtol=1e-4)

    # --- default path: bf16 MXU operands, f32 accumulation ---
    out_bf16 = jax.block_until_ready(homography_forward(coords_big, params))
    assert out_bf16.shape == (n_big, 8)
    assert jnp.allclose(out_bf16, ref_big, atol=3e-2, rtol=3e-2)

    print("KERNEL_OK")
</pallas_src>

<mosaic_0001>
module attributes {stable_mosaic.version = 11 : i64} {
  func.func @homography_mlp_kernel(%arg0: i32, %arg1: memref<1x128xf32, #tpu.memory_space<vmem>>, %arg2: memref<256x1xf32, #tpu.memory_space<vmem>>, %arg3: memref<256x1xf32, #tpu.memory_space<vmem>>, %arg4: memref<256x256xf32, #tpu.memory_space<vmem>>, %arg5: memref<256x1xf32, #tpu.memory_space<vmem>>, %arg6: memref<8x256xf32, #tpu.memory_space<vmem>>, %arg7: memref<8x1xf32, #tpu.memory_space<vmem>>, %arg8: memref<8x128xf32, #tpu.memory_space<vmem>>) attributes {dimension_semantics = [#tpu.dimension_semantics<parallel>], iteration_bounds = array<i64: 1>, scalar_prefetch = 0 : i64, scratch_operands = 0 : i64, tpu.core_type = #tpu.core_type<tc>, window_params = [{transform_indices = @transform_0, window_bounds = array<i64: 1, 128>}, {pipeline_mode = #tpu.pipeline_mode<synchronous>, transform_indices = @transform_1, window_bounds = array<i64: 256, 1>}, {pipeline_mode = #tpu.pipeline_mode<synchronous>, transform_indices = @transform_2, window_bounds = array<i64: 256, 1>}, {pipeline_mode = #tpu.pipeline_mode<synchronous>, transform_indices = @transform_3, window_bounds = array<i64: 256, 256>}, {pipeline_mode = #tpu.pipeline_mode<synchronous>, transform_indices = @transform_4, window_bounds = array<i64: 256, 1>}, {pipeline_mode = #tpu.pipeline_mode<synchronous>, transform_indices = @transform_5, window_bounds = array<i64: 8, 256>}, {pipeline_mode = #tpu.pipeline_mode<synchronous>, transform_indices = @transform_6, window_bounds = array<i64: 8, 1>}, {transform_indices = @transform_7, window_bounds = array<i64: 8, 128>}]} {
    %c0 = arith.constant 0 : index
    %c0_0 = arith.constant 0 : index
    %0 = vector.load %arg1[%c0, %c0_0] : memref<1x128xf32, #tpu.memory_space<vmem>>, vector<1x128xf32>
    %c0_1 = arith.constant 0 : index
    %c0_2 = arith.constant 0 : index
    %1 = vector.load %arg2[%c0_1, %c0_2] : memref<256x1xf32, #tpu.memory_space<vmem>>, vector<256x1xf32>
    %2 = vector.broadcast %1 : vector<256x1xf32> to vector<256x128xf32>
    %3 = vector.broadcast %0 : vector<1x128xf32> to vector<256x128xf32>
    %4 = arith.mulf %2, %3 : vector<256x128xf32>
    %c0_3 = arith.constant 0 : index
    %c0_4 = arith.constant 0 : index
    %5 = vector.load %arg3[%c0_3, %c0_4] : memref<256x1xf32, #tpu.memory_space<vmem>>, vector<256x1xf32>
    %6 = vector.broadcast %5 : vector<256x1xf32> to vector<256x128xf32>
    %7 = arith.addf %4, %6 : vector<256x128xf32>
    %cst = arith.constant 0.000000e+00 : f32
    %8 = vector.broadcast %cst : f32 to vector<256x128xf32>
    %9 = arith.maximumf %7, %8 : vector<256x128xf32>
    %c0_5 = arith.constant 0 : index
    %c0_6 = arith.constant 0 : index
    %10 = vector.load %arg4[%c0_5, %c0_6] : memref<256x256xf32, #tpu.memory_space<vmem>>, vector<256x256xf32>
    %cst_7 = arith.constant dense<0.000000e+00> : vector<256x128xf32>
    %11 = tpu.matmul %10, %9, %cst_7 {dimension_numbers = #tpu.dot_dimension_numbers<[1], [0], [0], [1], [0, 0, 1, 1], [], []>} : vector<256x256xf32>, vector<256x128xf32>, vector<256x128xf32> -> vector<256x128xf32>
    %c0_8 = arith.constant 0 : index
    %c0_9 = arith.constant 0 : index
    %12 = vector.load %arg5[%c0_8, %c0_9] : memref<256x1xf32, #tpu.memory_space<vmem>>, vector<256x1xf32>
    %13 = vector.broadcast %12 : vector<256x1xf32> to vector<256x128xf32>
    %14 = arith.addf %11, %13 : vector<256x128xf32>
    %cst_10 = arith.constant 0.000000e+00 : f32
    %15 = vector.broadcast %cst_10 : f32 to vector<256x128xf32>
    %16 = arith.maximumf %14, %15 : vector<256x128xf32>
    %c0_11 = arith.constant 0 : index
    %c0_12 = arith.constant 0 : index
    %17 = vector.load %arg6[%c0_11, %c0_12] : memref<8x256xf32, #tpu.memory_space<vmem>>, vector<8x256xf32>
    %cst_13 = arith.constant dense<0.000000e+00> : vector<8x128xf32>
    %18 = tpu.matmul %17, %16, %cst_13 {dimension_numbers = #tpu.dot_dimension_numbers<[1], [0], [0], [1], [0, 0, 1, 1], [], []>} : vector<8x256xf32>, vector<256x128xf32>, vector<8x128xf32> -> vector<8x128xf32>
    %c0_14 = arith.constant 0 : index
    %c0_15 = arith.constant 0 : index
    %19 = vector.load %arg7[%c0_14, %c0_15] : memref<8x1xf32, #tpu.memory_space<vmem>>, vector<8x1xf32>
    %20 = vector.broadcast %19 : vector<8x1xf32> to vector<8x128xf32>
    %21 = arith.addf %18, %20 : vector<8x128xf32>
    %c0_16 = arith.constant 0 : index
    %c0_17 = arith.constant 0 : index
    %22 = vector.load %arg8[%c0_16, %c0_17] : memref<8x128xf32, #tpu.memory_space<vmem>>, vector<8x128xf32>
    tpu.vector_store %arg8[%c0_16, %c0_17], %21 {strides = array<i32>} : memref<8x128xf32, #tpu.memory_space<vmem>>, vector<8x128xf32>,
    return
  }
  func.func @transform_0(%arg0: i32) -> (i32, i32) {
    %c0_i32 = arith.constant 0 : i32
    %c0_i32_0 = arith.constant 0 : i32
    return %c0_i32, %arg0 : i32, i32
  }
  func.func @transform_1(%arg0: i32) -> (i32, i32) {
    %c0_i32 = arith.constant 0 : i32
    %c0_i32_0 = arith.constant 0 : i32
    %c0_i32_1 = arith.constant 0 : i32
    return %c0_i32, %c0_i32_0 : i32, i32
  }
  func.func @transform_2(%arg0: i32) -> (i32, i32) {
    %c0_i32 = arith.constant 0 : i32
    %c0_i32_0 = arith.constant 0 : i32
    %c0_i32_1 = arith.constant 0 : i32
    return %c0_i32, %c0_i32_0 : i32, i32
  }
  func.func @transform_3(%arg0: i32) -> (i32, i32) {
    %c0_i32 = arith.constant 0 : i32
    %c0_i32_0 = arith.constant 0 : i32
    %c0_i32_1 = arith.constant 0 : i32
    return %c0_i32, %c0_i32_0 : i32, i32
  }
  func.func @transform_4(%arg0: i32) -> (i32, i32) {
    %c0_i32 = arith.constant 0 : i32
    %c0_i32_0 = arith.constant 0 : i32
    %c0_i32_1 = arith.constant 0 : i32
    return %c0_i32, %c0_i32_0 : i32, i32
  }
  func.func @transform_5(%arg0: i32) -> (i32, i32) {
    %c0_i32 = arith.constant 0 : i32
    %c0_i32_0 = arith.constant 0 : i32
    %c0_i32_1 = arith.constant 0 : i32
    return %c0_i32, %c0_i32_0 : i32, i32
  }
  func.func @transform_6(%arg0: i32) -> (i32, i32) {
    %c0_i32 = arith.constant 0 : i32
    %c0_i32_0 = arith.constant 0 : i32
    %c0_i32_1 = arith.constant 0 : i32
    return %c0_i32, %c0_i32_0 : i32, i32
  }
  func.func @transform_7(%arg0: i32) -> (i32, i32) {
    %c0_i32 = arith.constant 0 : i32
    %c0_i32_0 = arith.constant 0 : i32
    return %c0_i32, %arg0 : i32, i32
  }
}

</mosaic_0001>

<bundles_post_ra>
// kernel: tpu_custom_call.1
= control target key start
LH: loop header
LB: loop body
LE: loop exit
PB: predicated region body
PF: predicated region fallthrough
CT: control target
= control target key end

     0   :  { %v1297_v2 = vmov 0   ;;  %v1298_v9 = vmov 0.0|0.0   ;;  %s1958_s0 = inlined_call_operand.vmem [shape: f32[1,128], index: 0, kind: input, shape index: {}]   ;;  %s1959_s1 = inlined_call_operand.vmem [shape: f32[256,1], index: 1, kind: input, shape index: {}]   ;;  %s1960_s2 = inlined_call_operand.vmem [shape: f32[256,1], index: 2, kind: input, shape index: {}]   ;;  %s1961_s3 = inlined_call_operand.vmem [shape: f32[256,256], index: 3, kind: input, shape index: {}]   ;;  %s1962_s4 = inlined_call_operand.vmem [shape: f32[256,1], index: 4, kind: input, shape index: {}]   ;;  %s1963_s5 = inlined_call_operand.vmem [shape: f32[8,256], index: 5, kind: input, shape index: {}]   ;;  %s1964_s6 = inlined_call_operand.vmem [shape: f32[8,1], index: 6, kind: input, shape index: {}]   ;;  %s1965_s7 = inlined_call_operand.hbm [shape: f32[8,128], index: 7, kind: output, shape index: {}]  }
   0x1   :  { %v258_v0 = vld [vmem:[%s1960_s2] sm:$0xff]  ;;  %1272 = vset.pattern.permute.xlu1 %v1297_v2  ;;  %1271 = vset.pattern.permute.xlu0 %v1297_v2  ;;  %v259_v3 = vld [vmem:[%s1960_s2 + $0x8] sm:$0xff]  ;;  %v31_v5 = vld [vmem:[%s1959_s1 + $0x18] sm:$0xff] }
   0x2   :  { %v28_v1 = vld [vmem:[%s1959_s1] sm:$0xff]  ;;  %292 = vperm.xlu1 %1272, %v258_v0   ;;  %v29_v4 = vld [vmem:[%s1959_s1 + $0x8] sm:$0xff]  ;;  %v30_v6 = vld [vmem:[%s1959_s1 + $0x10] sm:$0xff]  ;;  %1156 = vmatprep.subr.bf16.mxu0 %v1298_v9 }
   0x3   :  { %62 = vperm.xlu0 %1271, %v28_v1   ;;  %v261_v7 = vld [vmem:[%s1960_s2 + $0x18] sm:$0xff]  ;;  %v260_v8 = vld [vmem:[%s1960_s2 + $0x10] sm:$0xff]  ;;  %1236 = vmatprep.subr.bf16.mxu1 %v1298_v9  ;;  %v33_v10 = vld [vmem:[%s1959_s1 + $0x28] sm:$0xff] }
   0x4   :  { %v32_v11 = vld [vmem:[%s1959_s1 + $0x20] sm:$0xff]  ;;  %v263_v12 = vld [vmem:[%s1960_s2 + $0x28] sm:$0xff]  ;;  %v35_v14 = vld [vmem:[%s1959_s1 + $0x38] sm:$0xff] }
   0x5   :  { %v262_v13 = vld [vmem:[%s1960_s2 + $0x20] sm:$0xff]  ;;  %v34_v15 = vld [vmem:[%s1959_s1 + $0x30] sm:$0xff] }
   0x6   :  { %297 = vperm.xlu1 %1272, %v259_v3  }
   0x7   :  { %67 = vperm.xlu0 %1271, %v29_v4  }
   0xa   :  { %77 = vperm.xlu1 %1272, %v31_v5  }
   0xb   :  { %72 = vperm.xlu0 %1271, %v30_v6  }
   0xe   :  { %307 = vperm.xlu1 %1272, %v261_v7  }
   0xf   :  { %302 = vperm.xlu0 %1271, %v260_v8  }
  0x12   :  { %87 = vperm.xlu1 %1272, %v33_v10  }
  0x13   :  { %82 = vperm.xlu0 %1271, %v32_v11  }
  0x16   :  { %317 = vperm.xlu1 %1272, %v263_v12  }
  0x17   :  { %312 = vperm.xlu0 %1271, %v262_v13  }
  0x18   :  { %12 = vsyncpa [#allocation3], 0  ;;  %v265_v16 = vld [vmem:[%s1960_s2 + $0x38] sm:$0xff]  ;;  %v264_v17 = vld [vmem:[%s1960_s2 + $0x30] sm:$0xff]  ;;  %s1299_s19 = smov [#allocation2]  }
  0x19   :  { %v37_v18 = vld [vmem:[%s1959_s1 + $0x48] sm:$0xff]  ;;  %v36_v19 = vld [vmem:[%s1959_s1 + $0x40] sm:$0xff]  ;;  %v39_v22 = vld [vmem:[%s1959_s1 + $0x58] sm:$0xff] }
  0x1a   :  { %97 = vperm.xlu1 %1272, %v35_v14   ;;  %v267_v20 = vld [vmem:[%s1960_s2 + $0x48] sm:$0xff]  ;;  %v266_v21 = vld [vmem:[%s1960_s2 + $0x40] sm:$0xff]  ;;  %v38_v23 = vld [vmem:[%s1959_s1 + $0x50] sm:$0xff] }
  0x1b   :  { %92 = vperm.xlu0 %1271, %v34_v15   ;;  %v269_v24 = vld [vmem:[%s1960_s2 + $0x58] sm:$0xff]  ;;  %v268_v25 = vld [vmem:[%s1960_s2 + $0x50] sm:$0xff]  ;;  %v41_v26 = vld [vmem:[%s1959_s1 + $0x68] sm:$0xff] }
  0x1c   :  { %v40_v27 = vld [vmem:[%s1959_s1 + $0x60] sm:$0xff]  ;;  %v271_v28 = vld [vmem:[%s1960_s2 + $0x68] sm:$0xff]  ;;  %v43_v30 = vld [vmem:[%s1959_s1 + $0x78] sm:$0xff] }
  0x1d   :  { %v270_v29 = vld [vmem:[%s1960_s2 + $0x60] sm:$0xff]  ;;  %v42_v31 = vld [vmem:[%s1959_s1 + $0x70] sm:$0xff]  ;;  %v273_v32 = vld [vmem:[%s1960_s2 + $0x78] sm:$0xff] }
  0x1e   :  { %327 = vperm.xlu1 %1272, %v265_v16   ;;  %v272_v33 = vld [vmem:[%s1960_s2 + $0x70] sm:$0xff]  ;;  %v45_v34 = vld [vmem:[%s1959_s1 + $0x88] sm:$0xff]  ;;  %v44_v35 = vld [vmem:[%s1959_s1 + $0x80] sm:$0xff] }
  0x1f   :  { %322 = vperm.xlu0 %1271, %v264_v17   ;;  %v275_v36 = vld [vmem:[%s1960_s2 + $0x88] sm:$0xff]  ;;  %v274_v37 = vld [vmem:[%s1960_s2 + $0x80] sm:$0xff]  ;;  %v47_v38 = vld [vmem:[%s1959_s1 + $0x98] sm:$0xff] }
  0x20   :  { %v46_v39 = vld [vmem:[%s1959_s1 + $0x90] sm:$0xff]  ;;  %v277_v40 = vld [vmem:[%s1960_s2 + $0x98] sm:$0xff]  ;;  %v49_v42 = vld [vmem:[%s1959_s1 + $0xa8] sm:$0xff] }
  0x21   :  { %v276_v41 = vld [vmem:[%s1960_s2 + $0x90] sm:$0xff]  ;;  %v48_v43 = vld [vmem:[%s1959_s1 + $0xa0] sm:$0xff]  ;;  %v279_v44 = vld [vmem:[%s1960_s2 + $0xa8] sm:$0xff] }
  0x22   :  { %107 = vperm.xlu1 %1272, %v37_v18   ;;  %v278_v45 = vld [vmem:[%s1960_s2 + $0xa0] sm:$0xff]  ;;  %v51_v46 = vld [vmem:[%s1959_s1 + $0xb8] sm:$0xff]  ;;  %v50_v47 = vld [vmem:[%s1959_s1 + $0xb0] sm:$0xff] }
  0x23   :  { %102 = vperm.xlu0 %1271, %v36_v19   ;;  %v281_v48 = vld [vmem:[%s1960_s2 + $0xb8] sm:$0xff]  ;;  %v280_v49 = vld [vmem:[%s1960_s2 + $0xb0] sm:$0xff]  ;;  %v53_v50 = vld [vmem:[%s1959_s1 + $0xc8] sm:$0xff] }
  0x24   :  { %v52_v51 = vld [vmem:[%s1959_s1 + $0xc0] sm:$0xff]  ;;  %v283_v52 = vld [vmem:[%s1960_s2 + $0xc8] sm:$0xff]  ;;  %v55_v54 = vld [vmem:[%s1959_s1 + $0xd8] sm:$0xff] }
  0x25   :  { %v282_v53 = vld [vmem:[%s1960_s2 + $0xc0] sm:$0xff]  ;;  %v54_v55 = vld [vmem:[%s1959_s1 + $0xd0] sm:$0xff]  ;;  %v285_v56 = vld [vmem:[%s1960_s2 + $0xd8] sm:$0xff] }
  0x26   :  { %337 = vperm.xlu1 %1272, %v267_v20   ;;  %v284_v57 = vld [vmem:[%s1960_s2 + $0xd0] sm:$0xff]  ;;  %v57_v58 = vld [vmem:[%s1959_s1 + $0xe8] sm:$0xff]  ;;  %v56_v59 = vld [vmem:[%s1959_s1 + $0xe0] sm:$0xff] }
  0x27   :  { %332 = vperm.xlu0 %1271, %v266_v21   ;;  %v287_v60 = vld [vmem:[%s1960_s2 + $0xe8] sm:$0xff]  ;;  %v286_v61 = vld [vmem:[%s1960_s2 + $0xe0] sm:$0xff]  ;;  %v59_v62 = vld [vmem:[%s1959_s1 + $0xf8] sm:$0xff] }
  0x28   :  { %v58_v63 = vld [vmem:[%s1959_s1 + $0xf0] sm:$0xff]  ;;  %v289_v0 = vld [vmem:[%s1960_s2 + $0xf8] sm:$0xff]  ;;  %v1537_v2 = vld [vmem:[%s1958_s0] ss:$0 sm:$0xff]  ;;  %s1112_s0 = sshll.u32 %s1299_s19, 4  ;;  %s1113_s0 = int_to_ptr.vmem [resolvable:$true] %s1112_s0 }
  0x29   :  { %v288_v1 = vld [vmem:[%s1960_s2 + $0xf0] sm:$0xff]  ;;  %v595_v3 = vld [vmem:[%s1962_s4 + $0x88] sm:$0xff]  ;;  %v594_v4 = vld [vmem:[%s1962_s4 + $0x80] sm:$0xff]  ;;  %s1273_s20 = scalar_lea.vmem %s1113_s0, 128  ;;  %p1278_p1 = scmp.lt.s32.totalorder %s1113_s0, %s1113_s0 }
  0x2a   :  { %117 = vperm.xlu1 %1272, %v39_v22   ;;  %v579_v8 = vld [vmem:[%s1962_s4 + $0x8] sm:$0xff]  ;;  %v578_v10 = vld [vmem:[%s1962_s4] sm:$0xff]  ;;  %v549_v14 = vld [vmem:[%s1961_s3 + $0x118] sm:$0xff]  ;;  %p1274_p0 = scmp.ne.s32.totalorder %s1113_s0, %s1273_s20  ;;  %p1279_p2 = scmp.lt.s32.totalorder %s1273_s20, %s1273_s20 }
  0x2b   :  { %112 = vperm.xlu0 %1271, %v38_v23   ;;  %v515_v13 = vld [vmem:[%s1961_s3 + $0x8] sm:$0xff]  ;;  %v597_v17 = vld [vmem:[%s1962_s4 + $0x98] sm:$0xff]  ;;  %v596_v18 = vld [vmem:[%s1962_s4 + $0x90] sm:$0xff]  ;;  %919 = vmatprep.mubr.f32.mxu1 %v549_v14 }
  0x2c   :  { %834 = vmatprep.mubr.f32.mxu0 %v515_v13  ;;  %p1280_p3 = por %p1279_p2, %p1278_p1 }
  0x2e   :  { %347 = vperm.xlu1 %1272, %v269_v24   ;;  %v581_v24 = vld [vmem:[%s1962_s4 + $0x18] sm:$0xff]  ;;  %p1281_p4 = pnand %p1280_p3, %p1274_p0 }
  0x2f   :  { %342 = vperm.xlu0 %1271, %v268_v25   ;;  %v580_v25 = vld [vmem:[%s1962_s4 + $0x10] sm:$0xff] }
  0x32   :  { %127 = vperm.xlu1 %1272, %v41_v26  }
  0x33   :  { %122 = vperm.xlu0 %1271, %v40_v27  }
  0x36   :  { %357 = vperm.xlu1 %1272, %v271_v28  }
  0x37   :  { %352 = vperm.xlu0 %1271, %v270_v29  }
  0x3a   :  { %137 = vperm.xlu1 %1272, %v43_v30  }
  0x3b   :  { %132 = vperm.xlu0 %1271, %v42_v31  }
  0x3e   :  { %367 = vperm.xlu1 %1272, %v273_v32  }
  0x3f   :  { %362 = vperm.xlu0 %1271, %v272_v33   ;;  %v599_v33 = vld [vmem:[%s1962_s4 + $0xa8] sm:$0xff] }
  0x42   :  { %147 = vperm.xlu1 %1272, %v45_v34   ;;  %v598_v34 = vld [vmem:[%s1962_s4 + $0xa0] sm:$0xff] }
  0x43   :  { %142 = vperm.xlu0 %1271, %v44_v35  }
  0x46   :  { %377 = vperm.xlu1 %1272, %v275_v36  }
  0x47   :  { %372 = vperm.xlu0 %1271, %v274_v37  }
  0x4a   :  { %157 = vperm.xlu1 %1272, %v47_v38  }
  0x4b   :  { %152 = vperm.xlu0 %1271, %v46_v39  }
  0x4e   :  { %387 = vperm.xlu1 %1272, %v277_v40   ;;  %v583_v40 = vld [vmem:[%s1962_s4 + $0x28] sm:$0xff] }
  0x4f   :  { %382 = vperm.xlu0 %1271, %v276_v41   ;;  %v582_v41 = vld [vmem:[%s1962_s4 + $0x20] sm:$0xff] }
  0x52   :  { %167 = vperm.xlu1 %1272, %v49_v42  }
  0x53   :  { %162 = vperm.xlu0 %1271, %v48_v43  }
  0x56   :  { %397 = vperm.xlu1 %1272, %v279_v44  }
  0x57   :  { %392 = vperm.xlu0 %1271, %v278_v45  }
  0x5a   :  { %177 = vperm.xlu1 %1272, %v51_v46  }
  0x5b   :  { %172 = vperm.xlu0 %1271, %v50_v47  }
  0x5e   :  { %407 = vperm.xlu1 %1272, %v281_v48   ;;  %v601_v48 = vld [vmem:[%s1962_s4 + $0xb8] sm:$0xff] }
  0x5f   :  { %402 = vperm.xlu0 %1271, %v280_v49   ;;  %v600_v49 = vld [vmem:[%s1962_s4 + $0xb0] sm:$0xff] }
  0x62   :  { %187 = vperm.xlu1 %1272, %v53_v50  }
  0x63   :  { %182 = vperm.xlu0 %1271, %v52_v51  }
  0x66   :  { %417 = vperm.xlu1 %1272, %v283_v52  }
  0x67   :  { %412 = vperm.xlu0 %1271, %v282_v53  }
  0x6a   :  { %197 = vperm.xlu1 %1272, %v55_v54  }
  0x6b   :  { %192 = vperm.xlu0 %1271, %v54_v55   ;;  %v585_v55 = vld [vmem:[%s1962_s4 + $0x38] sm:$0xff] }
  0x6e   :  { %427 = vperm.xlu1 %1272, %v285_v56   ;;  %v584_v56 = vld [vmem:[%s1962_s4 + $0x30] sm:$0xff] }
  0x6f   :  { %422 = vperm.xlu0 %1271, %v284_v57  }
  0x72   :  { %207 = vperm.xlu1 %1272, %v57_v58  }
  0x73   :  { %202 = vperm.xlu0 %1271, %v56_v59  }
  0x76   :  { %437 = vperm.xlu1 %1272, %v287_v60  }
  0x77   :  { %432 = vperm.xlu0 %1271, %v286_v61  }
  0x7a   :  { %217 = vperm.xlu1 %1272, %v59_v62  }
  0x7b   :  { %212 = vperm.xlu0 %1271, %v58_v63   ;;  %v603_v63 = vld [vmem:[%s1962_s4 + $0xc8] sm:$0xff] }
  0x7e   :  { %447 = vperm.xlu1 %1272, %v289_v0   ;;  %v602_v0 = vld [vmem:[%s1962_s4 + $0xc0] sm:$0xff] }
  0x7f   :  { %442 = vperm.xlu0 %1271, %v288_v1  }
  0x81   :  { %v293_v5 = vpop.permute.xlu1 %292 }
  0x82   :  { %v63_v6 = vpop.permute.xlu0 %62  ;;  %697 = vperm.xlu1 %1272, %v595_v3  }
  0x83   :  { %v226_v7 = vmul.f32 %v1537_v2, %v63_v6  ;;  %692 = vperm.xlu0 %1271, %v594_v4  }
  0x85   :  { %v298_v11 = vpop.permute.xlu1 %297  ;;  %v450_v15 = vadd.f32 %v293_v5, %v226_v7  ;;  %v587_v7 = vld [vmem:[%s1962_s4 + $0x48] sm:$0xff] }
  0x86   :  { %v68_v12 = vpop.permute.xlu0 %67  ;;  %617 = vperm.xlu1 %1272, %v579_v8   ;;  %v586_v8 = vld [vmem:[%s1962_s4 + $0x40] sm:$0xff] }
  0x87   :  { %v227_v16 = vmul.f32 %v1537_v2, %v68_v12  ;;  %612 = vperm.xlu0 %1271, %v578_v10   ;;  %v482_v22 = vmax.f32 %v450_v15, 0.0 }
  0x89   :  { %v451_v19 = vadd.f32 %v298_v11, %v227_v16  ;;  %v78_v20 = vpop.permute.xlu1 %77  ;;  %v605_v16 = vld [vmem:[%s1962_s4 + $0xd8] sm:$0xff] }
  0x8a   :  { %v73_v21 = vpop.permute.xlu0 %72  ;;  %707 = vperm.xlu1 %1272, %v597_v17   ;;  %v229_v26 = vmul.f32 %v1537_v2, %v78_v20  ;;  %v604_v17 = vld [vmem:[%s1962_s4 + $0xd0] sm:$0xff] }
  0x8b   :  { %v483_v23 = vmax.f32 %v451_v19, 0.0  ;;  %702 = vperm.xlu0 %1271, %v596_v18   ;;  %v228_v27 = vmul.f32 %v1537_v2, %v73_v21 }
  0x8d   :  { %v1157_v28 = vpack.c.bf16 %v483_v23, %v482_v22  ;;  %v308_v29 = vpop.permute.xlu1 %307  ;;  %v589_v23 = vld [vmem:[%s1962_s4 + $0x58] sm:$0xff] }
  0x8e   :  { %v303_v30 = vpop.permute.xlu0 %302  ;;  %v453_v31 = vadd.f32 %v308_v29, %v229_v26  ;;  %627 = vperm.xlu1 %1272, %v581_v24   ;;  %v588_v24 = vld [vmem:[%s1962_s4 + $0x50] sm:$0xff] }
  0x8f   :  { %v452_v32 = vadd.f32 %v303_v30, %v228_v27  ;;  %622 = vperm.xlu0 %1271, %v580_v25   ;;  %1158 = vmatpush1.bf16.msra.mxu0 %v1157_v28 }
  0x90   :  { %1252 = vmatpush1.bf16.msra.mxu1 %v1157_v28  ;;  %v485_v35 = vmax.f32 %v453_v31, 0.0  ;;  %1159 = vmatprep.subr.bf16.mxu0 %v1298_v9  ;;  %v607_v31 = vld [vmem:[%s1962_s4 + $0xe8] sm:$0xff] }
  0x91   :  { %v484_v36 = vmax.f32 %v452_v32, 0.0  ;;  %1237 = vmatprep.subr.bf16.mxu1 %v1298_v9  ;;  %v88_v37 = vpop.permute.xlu1 %87  ;;  %v606_v32 = vld [vmem:[%s1962_s4 + $0xe0] sm:$0xff] }
  0x92   :  { %v83_v38 = vpop.permute.xlu0 %82  ;;  %717 = vperm.xlu1 %1272, %v599_v33   ;;  %v231_v42 = vmul.f32 %v1537_v2, %v88_v37 }
  0x93   :  { %v1160_v39 = vpack.c.bf16 %v485_v35, %v484_v36  ;;  %712 = vperm.xlu0 %1271, %v598_v34   ;;  %v230_v43 = vmul.f32 %v1537_v2, %v83_v38  ;;  %v591_v38 = vld [vmem:[%s1962_s4 + $0x68] sm:$0xff] }
  0x95   :  { %1161 = vmatpush1.bf16.msra.mxu0 %v1160_v39  ;;  %1253 = vmatpush1.bf16.msra.mxu1 %v1160_v39  ;;  %v318_v44 = vpop.permute.xlu1 %317  ;;  %v590_v39 = vld [vmem:[%s1962_s4 + $0x60] sm:$0xff] }
  0x96   :  { %v313_v45 = vpop.permute.xlu0 %312  ;;  %1162 = vmatprep.subr.bf16.mxu0 %v1298_v9  ;;  %1238 = vmatprep.subr.bf16.mxu1 %v1298_v9  ;;  %v455_v46 = vadd.f32 %v318_v44, %v231_v42 }
  0x97   :  { %v454_v47 = vadd.f32 %v313_v45, %v230_v43  ;;  %637 = vperm.xlu1 %1272, %v583_v40   ;;  %632 = vperm.xlu0 %1271, %v582_v41  }
  0x98   :  { %v487_v50 = vmax.f32 %v455_v46, 0.0  ;;  %v609_v46 = vld [vmem:[%s1962_s4 + $0xf8] sm:$0xff] }
  0x99   :  { %v486_v51 = vmax.f32 %v454_v47, 0.0  ;;  %v98_v52 = vpop.permute.xlu1 %97  ;;  %v608_v47 = vld [vmem:[%s1962_s4 + $0xf0] sm:$0xff] }
  0x9a   :  { %v93_v53 = vpop.permute.xlu0 %92  ;;  %v233_v57 = vmul.f32 %v1537_v2, %v98_v52 }
  0x9b   :  { %v1163_v54 = vpack.c.bf16 %v487_v50, %v486_v51  ;;  %727 = vperm.xlu1 %1272, %v601_v48   ;;  %722 = vperm.xlu0 %1271, %v600_v49   ;;  %v232_v58 = vmul.f32 %v1537_v2, %v93_v53  ;;  %v593_v53 = vld [vmem:[%s1962_s4 + $0x78] sm:$0xff] }
  0x9d   :  { %1164 = vmatpush1.bf16.msra.mxu0 %v1163_v54  ;;  %1254 = vmatpush1.bf16.msra.mxu1 %v1163_v54  ;;  %v328_v59 = vpop.permute.xlu1 %327  ;;  %v592_v54 = vld [vmem:[%s1962_s4 + $0x70] sm:$0xff] }
  0x9e   :  { %v323_v60 = vpop.permute.xlu0 %322  ;;  %1165 = vmatprep.subr.bf16.mxu0 %v1298_v9  ;;  %1239 = vmatprep.subr.bf16.mxu1 %v1298_v9  ;;  %v457_v61 = vadd.f32 %v328_v59, %v233_v57 }
  0x9f   :  { %v456_v62 = vadd.f32 %v323_v60, %v232_v58  ;;  %647 = vperm.xlu1 %1272, %v585_v55   ;;  %642 = vperm.xlu0 %1271, %v584_v56  }
  0xa0   :  { %v489_v1 = vmax.f32 %v457_v61, 0.0  ;;  %v1029_v61 = vld [vmem:[%s1964_s6] sm:$0xff] }
  0xa1   :  { %v488_v3 = vmax.f32 %v456_v62, 0.0  ;;  %v108_v4 = vpop.permute.xlu1 %107 }
  0xa2   :  { %v103_v5 = vpop.permute.xlu0 %102  ;;  %v235_v10 = vmul.f32 %v1537_v2, %v108_v4 }
  0xa3   :  { %v1166_v6 = vpack.c.bf16 %v489_v1, %v488_v3  ;;  %737 = vperm.xlu1 %1272, %v603_v63   ;;  %732 = vperm.xlu0 %1271, %v602_v0   ;;  %v234_v11 = vmul.f32 %v1537_v2, %v103_v5 }
  0xa5   :  { %1167 = vmatpush1.bf16.msra.mxu0 %v1166_v6  ;;  %1255 = vmatpush1.bf16.msra.mxu1 %v1166_v6  ;;  %v338_v12 = vpop.permute.xlu1 %337 }
  0xa6   :  { %v333_v13 = vpop.permute.xlu0 %332  ;;  %1168 = vmatprep.subr.bf16.mxu0 %v1298_v9  ;;  %1240 = vmatprep.subr.bf16.mxu1 %v1298_v9  ;;  %v459_v14 = vadd.f32 %v338_v12, %v235_v10 }
  0xa7   :  { %v458_v15 = vadd.f32 %v333_v13, %v234_v11  ;;  %657 = vperm.xlu1 %1272, %v587_v7   ;;  %652 = vperm.xlu0 %1271, %v586_v8  }
  0xa8   :  { %v491_v18 = vmax.f32 %v459_v14, 0.0 }
  0xa9   :  { %v490_v19 = vmax.f32 %v458_v15, 0.0  ;;  %v118_v20 = vpop.permute.xlu1 %117 }
  0xaa   :  { %v113_v21 = vpop.permute.xlu0 %112  ;;  %v237_v25 = vmul.f32 %v1537_v2, %v118_v20 }
  0xab   :  { %v1169_v22 = vpack.c.bf16 %v491_v18, %v490_v19  ;;  %747 = vperm.xlu1 %1272, %v605_v16   ;;  %742 = vperm.xlu0 %1271, %v604_v17   ;;  %v236_v26 = vmul.f32 %v1537_v2, %v113_v21 }
  0xad   :  { %1170 = vmatpush1.bf16.msra.mxu0 %v1169_v22  ;;  %1256 = vmatpush1.bf16.msra.mxu1 %v1169_v22  ;;  %v348_v27 = vpop.permute.xlu1 %347 }
  0xae   :  { %v343_v28 = vpop.permute.xlu0 %342  ;;  %1171 = vmatprep.subr.bf16.mxu0 %v1298_v9  ;;  %1241 = vmatprep.subr.bf16.mxu1 %v1298_v9  ;;  %v461_v29 = vadd.f32 %v348_v27, %v237_v25 }
  0xaf   :  { %v460_v30 = vadd.f32 %v343_v28, %v236_v26  ;;  %667 = vperm.xlu1 %1272, %v589_v23   ;;  %662 = vperm.xlu0 %1271, %v588_v24  }
  0xb0   :  { %v493_v33 = vmax.f32 %v461_v29, 0.0 }
  0xb1   :  { %v492_v34 = vmax.f32 %v460_v30, 0.0  ;;  %v128_v35 = vpop.permute.xlu1 %127 }
  0xb2   :  { %v123_v36 = vpop.permute.xlu0 %122  ;;  %v239_v40 = vmul.f32 %v1537_v2, %v128_v35 }
  0xb3   :  { %v1172_v37 = vpack.c.bf16 %v493_v33, %v492_v34  ;;  %757 = vperm.xlu1 %1272, %v607_v31   ;;  %752 = vperm.xlu0 %1271, %v606_v32   ;;  %v238_v41 = vmul.f32 %v1537_v2, %v123_v36 }
  0xb5   :  { %1173 = vmatpush1.bf16.msra.mxu0 %v1172_v37  ;;  %1257 = vmatpush1.bf16.msra.mxu1 %v1172_v37  ;;  %v358_v42 = vpop.permute.xlu1 %357 }
  0xb6   :  { %v353_v43 = vpop.permute.xlu0 %352  ;;  %1174 = vmatprep.subr.bf16.mxu0 %v1298_v9  ;;  %1242 = vmatprep.subr.bf16.mxu1 %v1298_v9  ;;  %v463_v44 = vadd.f32 %v358_v42, %v239_v40 }
  0xb7   :  { %v462_v45 = vadd.f32 %v353_v43, %v238_v41  ;;  %677 = vperm.xlu1 %1272, %v591_v38   ;;  %672 = vperm.xlu0 %1271, %v590_v39  }
  0xb8   :  { %v495_v48 = vmax.f32 %v463_v44, 0.0 }
  0xb9   :  { %v494_v49 = vmax.f32 %v462_v45, 0.0  ;;  %v138_v50 = vpop.permute.xlu1 %137 }
  0xba   :  { %v133_v51 = vpop.permute.xlu0 %132  ;;  %v241_v55 = vmul.f32 %v1537_v2, %v138_v50 }
  0xbb   :  { %v1175_v52 = vpack.c.bf16 %v495_v48, %v494_v49  ;;  %767 = vperm.xlu1 %1272, %v609_v46   ;;  %762 = vperm.xlu0 %1271, %v608_v47   ;;  %v240_v56 = vmul.f32 %v1537_v2, %v133_v51 }
  0xbd   :  { %1176 = vmatpush1.bf16.msra.mxu0 %v1175_v52  ;;  %1258 = vmatpush1.bf16.msra.mxu1 %v1175_v52  ;;  %v368_v57 = vpop.permute.xlu1 %367 }
  0xbe   :  { %v363_v58 = vpop.permute.xlu0 %362  ;;  %1177 = vmatprep.subr.bf16.mxu0 %v1298_v9  ;;  %1243 = vmatprep.subr.bf16.mxu1 %v1298_v9  ;;  %v465_v59 = vadd.f32 %v368_v57, %v241_v55 }
  0xbf   :  { %v464_v60 = vadd.f32 %v363_v58, %v240_v56  ;;  %687 = vperm.xlu1 %1272, %v593_v53   ;;  %682 = vperm.xlu0 %1271, %v592_v54  }
  0xc0   :  { %v497_v62 = vmax.f32 %v465_v59, 0.0 }
  0xc1   :  { %v496_v63 = vmax.f32 %v464_v60, 0.0  ;;  %v148_v0 = vpop.permute.xlu1 %147 }
  0xc2   :  { %v143_v1 = vpop.permute.xlu0 %142  ;;  %v243_v4 = vmul.f32 %v1537_v2, %v148_v0 }
  0xc3   :  { %v1178_v3 = vpack.c.bf16 %v497_v62, %v496_v63  ;;  %1032 = vperm.xlu0 %1271, %v1029_v61   ;;  %v242_v5 = vmul.f32 %v1537_v2, %v143_v1 }
  0xc5   :  { %1179 = vmatpush1.bf16.msra.mxu0 %v1178_v3  ;;  %1259 = vmatpush1.bf16.msra.mxu1 %v1178_v3  ;;  %v378_v6 = vpop.permute.xlu1 %377 }
  0xc6   :  { %v373_v7 = vpop.permute.xlu0 %372  ;;  %1180 = vmatprep.subr.bf16.mxu0 %v1298_v9  ;;  %1244 = vmatprep.subr.bf16.mxu1 %v1298_v9  ;;  %v467_v8 = vadd.f32 %v378_v6, %v243_v4 }
  0xc7   :  { %v466_v10 = vadd.f32 %v373_v7, %v242_v5 }
  0xc8   :  { %v499_v11 = vmax.f32 %v467_v8, 0.0 }
  0xc9   :  { %v498_v12 = vmax.f32 %v466_v10, 0.0  ;;  %v158_v13 = vpop.permute.xlu1 %157 }
  0xca   :  { %v153_v14 = vpop.permute.xlu0 %152  ;;  %v245_v16 = vmul.f32 %v1537_v2, %v158_v13 }
  0xcb   :  { %v1181_v15 = vpack.c.bf16 %v499_v11, %v498_v12  ;;  %v244_v17 = vmul.f32 %v1537_v2, %v153_v14 }
  0xcd   :  { %1182 = vmatpush1.bf16.msra.mxu0 %v1181_v15  ;;  %1260 = vmatpush1.bf16.msra.mxu1 %v1181_v15  ;;  %v388_v18 = vpop.permute.xlu1 %387 }
  0xce   :  { %v383_v19 = vpop.permute.xlu0 %382  ;;  %1183 = vmatprep.subr.bf16.mxu0 %v1298_v9  ;;  %1245 = vmatprep.subr.bf16.mxu1 %v1298_v9  ;;  %v469_v20 = vadd.f32 %v388_v18, %v245_v16 }
  0xcf   :  { %v468_v21 = vadd.f32 %v383_v19, %v244_v17 }
  0xd0   :  { %v501_v22 = vmax.f32 %v469_v20, 0.0 }
  0xd1   :  { %v500_v23 = vmax.f32 %v468_v21, 0.0  ;;  %v168_v24 = vpop.permute.xlu1 %167 }
  0xd2   :  { %v163_v25 = vpop.permute.xlu0 %162  ;;  %v247_v27 = vmul.f32 %v1537_v2, %v168_v24 }
  0xd3   :  { %v1184_v26 = vpack.c.bf16 %v501_v22, %v500_v23  ;;  %v246_v28 = vmul.f32 %v1537_v2, %v163_v25 }
  0xd5   :  { %1185 = vmatpush1.bf16.msra.mxu0 %v1184_v26  ;;  %1261 = vmatpush1.bf16.msra.mxu1 %v1184_v26  ;;  %v398_v29 = vpop.permute.xlu1 %397 }
  0xd6   :  { %v393_v30 = vpop.permute.xlu0 %392  ;;  %1186 = vmatprep.subr.bf16.mxu0 %v1298_v9  ;;  %1246 = vmatprep.subr.bf16.mxu1 %v1298_v9  ;;  %v471_v31 = vadd.f32 %v398_v29, %v247_v27  ;;  %v514_v29 = vld [vmem:[%s1961_s3] sm:$0xff] }
  0xd7   :  { %v470_v32 = vadd.f32 %v393_v30, %v246_v28  ;;  %v517_v30 = vld [vmem:[%s1961_s3 + $0x18] sm:$0xff] }
  0xd8   :  { %v503_v33 = vmax.f32 %v471_v31, 0.0  ;;  %v516_v31 = vld [vmem:[%s1961_s3 + $0x10] sm:$0xff] }
  0xd9   :  { %v502_v34 = vmax.f32 %v470_v32, 0.0  ;;  %v178_v35 = vpop.permute.xlu1 %177  ;;  %v550_v32 = vld [vmem:[%s1961_s3 + $0x120] sm:$0xff] }
  0xda   :  { %v173_v36 = vpop.permute.xlu0 %172  ;;  %v249_v38 = vmul.f32 %v1537_v2, %v178_v35  ;;  %v518_v35 = vld [vmem:[%s1961_s3 + $0x20] sm:$0xff] }
  0xdb   :  { %v1187_v37 = vpack.c.bf16 %v503_v33, %v502_v34  ;;  %v248_v39 = vmul.f32 %v1537_v2, %v173_v36  ;;  %v519_v33 = vld [vmem:[%s1961_s3 + $0x28] sm:$0xff]  ;;  %v553_v34 = vld [vmem:[%s1961_s3 + $0x138] sm:$0xff]  ;;  %v552_v36 = vld [vmem:[%s1961_s3 + $0x130] sm:$0xff] }
  0xdd   :  { %1188 = vmatpush1.bf16.msra.mxu0 %v1187_v37  ;;  %1262 = vmatpush1.bf16.msra.mxu1 %v1187_v37  ;;  %v408_v40 = vpop.permute.xlu1 %407  ;;  %v521_v37 = vld [vmem:[%s1961_s3 + $0x38] sm:$0xff] }
  0xde   :  { %v403_v41 = vpop.permute.xlu0 %402  ;;  %1189 = vmatprep.subr.bf16.mxu0 %v1298_v9  ;;  %1247 = vmatprep.subr.bf16.mxu1 %v1298_v9  ;;  %v473_v42 = vadd.f32 %v408_v40, %v249_v38  ;;  %v555_v38 = vld [vmem:[%s1961_s3 + $0x148] sm:$0xff]  ;;  %v554_v40 = vld [vmem:[%s1961_s3 + $0x140] sm:$0xff] }
  0xdf   :  { %v472_v43 = vadd.f32 %v403_v41, %v248_v39  ;;  %v520_v39 = vld [vmem:[%s1961_s3 + $0x30] sm:$0xff]  ;;  %v523_v41 = vld [vmem:[%s1961_s3 + $0x48] sm:$0xff] }
  0xe0   :  { %v505_v44 = vmax.f32 %v473_v42, 0.0  ;;  %v557_v42 = vld [vmem:[%s1961_s3 + $0x158] sm:$0xff] }
  0xe1   :  { %v504_v45 = vmax.f32 %v472_v43, 0.0  ;;  %v188_v46 = vpop.permute.xlu1 %187  ;;  %v522_v43 = vld [vmem:[%s1961_s3 + $0x40] sm:$0xff] }
  0xe2   :  { %v183_v47 = vpop.permute.xlu0 %182  ;;  %v251_v49 = vmul.f32 %v1537_v2, %v188_v46  ;;  %v559_v46 = vld [vmem:[%s1961_s3 + $0x168] sm:$0xff] }
  0xe3   :  { %v1190_v48 = vpack.c.bf16 %v505_v44, %v504_v45  ;;  %v250_v50 = vmul.f32 %v1537_v2, %v183_v47  ;;  %v556_v44 = vld [vmem:[%s1961_s3 + $0x150] sm:$0xff]  ;;  %v525_v45 = vld [vmem:[%s1961_s3 + $0x58] sm:$0xff] }
  0xe4   :  { %v524_v47 = vld [vmem:[%s1961_s3 + $0x50] sm:$0xff] }
  0xe5   :  { %1191 = vmatpush1.bf16.msra.mxu0 %v1190_v48  ;;  %1263 = vmatpush1.bf16.msra.mxu1 %v1190_v48  ;;  %v418_v51 = vpop.permute.xlu1 %417  ;;  %v558_v48 = vld [vmem:[%s1961_s3 + $0x160] sm:$0xff] }
  0xe6   :  { %v413_v52 = vpop.permute.xlu0 %412  ;;  %1192 = vmatprep.subr.bf16.mxu0 %v1298_v9  ;;  %1248 = vmatprep.subr.bf16.mxu1 %v1298_v9  ;;  %v475_v53 = vadd.f32 %v418_v51, %v251_v49  ;;  %v527_v49 = vld [vmem:[%s1961_s3 + $0x68] sm:$0xff]  ;;  %v526_v51 = vld [vmem:[%s1961_s3 + $0x60] sm:$0xff] }
  0xe7   :  { %v474_v54 = vadd.f32 %v413_v52, %v250_v50  ;;  %v561_v50 = vld [vmem:[%s1961_s3 + $0x178] sm:$0xff]  ;;  %v560_v52 = vld [vmem:[%s1961_s3 + $0x170] sm:$0xff] }
  0xe8   :  { %v507_v55 = vmax.f32 %v475_v53, 0.0  ;;  %v529_v53 = vld [vmem:[%s1961_s3 + $0x78] sm:$0xff] }
  0xe9   :  { %v506_v56 = vmax.f32 %v474_v54, 0.0  ;;  %v198_v57 = vpop.permute.xlu1 %197  ;;  %v563_v54 = vld [vmem:[%s1961_s3 + $0x188] sm:$0xff] }
  0xea   :  { %v193_v58 = vpop.permute.xlu0 %192  ;;  %v253_v60 = vmul.f32 %v1537_v2, %v198_v57  ;;  %v531_v57 = vld [vmem:[%s1961_s3 + $0x88] sm:$0xff] }
  0xeb   :  { %v1193_v59 = vpack.c.bf16 %v507_v55, %v506_v56  ;;  %v252_v61 = vmul.f32 %v1537_v2, %v193_v58  ;;  %v528_v55 = vld [vmem:[%s1961_s3 + $0x70] sm:$0xff]  ;;  %v562_v56 = vld [vmem:[%s1961_s3 + $0x180] sm:$0xff]  ;;  %v565_v58 = vld [vmem:[%s1961_s3 + $0x198] sm:$0xff] }
  0xed   :  { %1194 = vmatpush1.bf16.msra.mxu0 %v1193_v59  ;;  %1264 = vmatpush1.bf16.msra.mxu1 %v1193_v59  ;;  %v428_v62 = vpop.permute.xlu1 %427  ;;  %v530_v59 = vld [vmem:[%s1961_s3 + $0x80] sm:$0xff] }
  0xee   :  { %v423_v63 = vpop.permute.xlu0 %422  ;;  %1195 = vmatprep.subr.bf16.mxu0 %v1298_v9  ;;  %1249 = vmatprep.subr.bf16.mxu1 %v1298_v9  ;;  %v477_v0 = vadd.f32 %v428_v62, %v253_v60  ;;  %v564_v60 = vld [vmem:[%s1961_s3 + $0x190] sm:$0xff]  ;;  %v567_v62 = vld [vmem:[%s1961_s3 + $0x1a8] sm:$0xff] }
  0xef   :  { %v476_v1 = vadd.f32 %v423_v63, %v252_v61  ;;  %v533_v61 = vld [vmem:[%s1961_s3 + $0x98] sm:$0xff]  ;;  %v532_v63 = vld [vmem:[%s1961_s3 + $0x90] sm:$0xff] }
  0xf0   :  { %v509_v3 = vmax.f32 %v477_v0, 0.0  ;;  %v566_v0 = vld [vmem:[%s1961_s3 + $0x1a0] sm:$0xff] }
  0xf1   :  { %v508_v4 = vmax.f32 %v476_v1, 0.0  ;;  %v208_v5 = vpop.permute.xlu1 %207  ;;  %v535_v1 = vld [vmem:[%s1961_s3 + $0xa8] sm:$0xff] }
  0xf2   :  { %v203_v6 = vpop.permute.xlu0 %202  ;;  %v255_v8 = vmul.f32 %v1537_v2, %v208_v5  ;;  %v568_v5 = vld [vmem:[%s1961_s3 + $0x1b0] sm:$0xff] }
  0xf3   :  { %v1196_v7 = vpack.c.bf16 %v509_v3, %v508_v4  ;;  %v254_v10 = vmul.f32 %v1537_v2, %v203_v6  ;;  %v569_v3 = vld [vmem:[%s1961_s3 + $0x1b8] sm:$0xff]  ;;  %v534_v4 = vld [vmem:[%s1961_s3 + $0xa0] sm:$0xff] }
  0xf4   :  { %v537_v6 = vld [vmem:[%s1961_s3 + $0xb8] sm:$0xff] }
  0xf5   :  { %1197 = vmatpush1.bf16.msra.mxu0 %v1196_v7  ;;  %1265 = vmatpush1.bf16.msra.mxu1 %v1196_v7  ;;  %v438_v11 = vpop.permute.xlu1 %437  ;;  %v571_v7 = vld [vmem:[%s1961_s3 + $0x1c8] sm:$0xff] }
  0xf6   :  { %v433_v12 = vpop.permute.xlu0 %432  ;;  %1198 = vmatprep.subr.bf16.mxu0 %v1298_v9  ;;  %1250 = vmatprep.subr.bf16.mxu1 %v1298_v9  ;;  %v479_v13 = vadd.f32 %v438_v11, %v255_v8  ;;  %v536_v8 = vld [vmem:[%s1961_s3 + $0xb0] sm:$0xff]  ;;  %v539_v11 = vld [vmem:[%s1961_s3 + $0xc8] sm:$0xff] }
  0xf7   :  { %v478_v14 = vadd.f32 %v433_v12, %v254_v10  ;;  %v570_v10 = vld [vmem:[%s1961_s3 + $0x1c0] sm:$0xff]  ;;  %v573_v12 = vld [vmem:[%s1961_s3 + $0x1d8] sm:$0xff] }
  0xf8   :  { %v511_v15 = vmax.f32 %v479_v13, 0.0  ;;  %v538_v13 = vld [vmem:[%s1961_s3 + $0xc0] sm:$0xff] }
  0xf9   :  { %v510_v16 = vmax.f32 %v478_v14, 0.0  ;;  %v218_v17 = vpop.permute.xlu1 %217  ;;  %v572_v14 = vld [vmem:[%s1961_s3 + $0x1d0] sm:$0xff] }
  0xfa   :  { %v213_v18 = vpop.permute.xlu0 %212  ;;  %v257_v20 = vmul.f32 %v1537_v2, %v218_v17  ;;  %v540_v17 = vld [vmem:[%s1961_s3 + $0xd0] sm:$0xff] }
  0xfb   :  { %v1199_v19 = vpack.c.bf16 %v511_v15, %v510_v16  ;;  %v256_v21 = vmul.f32 %v1537_v2, %v213_v18  ;;  %v548_v2 = vld [vmem:[%s1961_s3 + $0x110] sm:$0xff]  ;;  %v541_v15 = vld [vmem:[%s1961_s3 + $0xd8] sm:$0xff]  ;;  %v575_v16 = vld [vmem:[%s1961_s3 + $0x1e8] sm:$0xff] }
  0xfc   :  { %v574_v18 = vld [vmem:[%s1961_s3 + $0x1e0] sm:$0xff] }
  0xfd   :  { %1200 = vmatpush1.bf16.msra.mxu0 %v1199_v19  ;;  %1266 = vmatpush1.bf16.msra.mxu1 %v1199_v19  ;;  %v448_v22 = vpop.permute.xlu1 %447  ;;  %v543_v19 = vld [vmem:[%s1961_s3 + $0xe8] sm:$0xff] }
  0xfe   :  { %v443_v23 = vpop.permute.xlu0 %442  ;;  %1201 = vmatprep.subr.bf16.mxu0 %v1298_v9  ;;  %1251 = vmatprep.subr.bf16.mxu1 %v1298_v9  ;;  %v481_v24 = vadd.f32 %v448_v22, %v257_v20  ;;  %v551_v9 = vld [vmem:[%s1961_s3 + $0x128] sm:$0xff]  ;;  %v577_v20 = vld [vmem:[%s1961_s3 + $0x1f8] sm:$0xff]  ;;  %v576_v22 = vld [vmem:[%s1961_s3 + $0x1f0] sm:$0xff] }
  0xff   :  { %v480_v25 = vadd.f32 %v443_v23, %v256_v21  ;;  %v542_v21 = vld [vmem:[%s1961_s3 + $0xe0] sm:$0xff]  ;;  %v545_v23 = vld [vmem:[%s1961_s3 + $0xf8] sm:$0xff] }
 0x100   :  { %v513_v26 = vmax.f32 %v481_v24, 0.0  ;;  %v544_v24 = vld [vmem:[%s1961_s3 + $0xf0] sm:$0xff] }
 0x101   :  { %v512_v27 = vmax.f32 %v480_v25, 0.0  ;;  %v547_v25 = vld [vmem:[%s1961_s3 + $0x108] sm:$0xff] }
 0x103   :  { %v1202_v28 = vpack.c.bf16 %v513_v26, %v512_v27  ;;  %v546_v26 = vld [vmem:[%s1961_s3 + $0x100] sm:$0xff]  ;;  %v1892_v27 = vpop.permute.xlu0 %692 }
 0x105   :  { %1203 = vmatpush1.bf16.msra.mxu0 %v1202_v28  ;;  %1267 = vmatpush1.bf16.msra.mxu1 %v1202_v28  ;;  %v1894_v28 = vpop.permute.xlu1 %697 }
 0x108   :  { %835 = vmatmul.mubr.f32.vlgmr.msra.gmra.mrb[0].mxu0 %v514_v29  ;;  %920 = vmatmul.mubr.f32.vlgmr.msra.gmra.mrb[0].mxu1 %v548_v2  ;;  %v613_v29 = vpop.permute.xlu0 %612 }
 0x109   :  { %839 = vmatprep.mubr.f32.mxu0 %v517_v30  ;;  %924 = vmatprep.mubr.f32.mxu1 %v551_v9  ;;  %v618_v2 = vpop.permute.xlu1 %617 }
 0x10c   :  { %840 = vmatmul.mubr.f32.gmra.mrb[2].mxu0 %v516_v31  ;;  %925 = vmatmul.mubr.f32.gmra.mrb[2].mxu1 %v550_v32  ;;  %v703_v30 = vpop.permute.xlu0 %702  ;;  %v1028_v31 = vld [vmem:[%s1963_s5 + $0x8] sm:$0xff] }
 0x10d   :  { %844 = vmatprep.mubr.f32.mxu0 %v519_v33  ;;  %929 = vmatprep.mubr.f32.mxu1 %v553_v34  ;;  %v708_v9 = vpop.permute.xlu1 %707 }
 0x110   :  { %845 = vmatmul.mubr.f32.gmra.mrb[4].mxu0 %v518_v35  ;;  %930 = vmatmul.mubr.f32.gmra.mrb[4].mxu1 %v552_v36  ;;  %v623_v32 = vpop.permute.xlu0 %622 }
 0x111   :  { %849 = vmatprep.mubr.f32.mxu0 %v521_v37  ;;  %934 = vmatprep.mubr.f32.mxu1 %v555_v38  ;;  %v628_v33 = vpop.permute.xlu1 %627 }
 0x114   :  { %850 = vmatmul.mubr.f32.gmra.mrb[6].mxu0 %v520_v39  ;;  %935 = vmatmul.mubr.f32.gmra.mrb[6].mxu1 %v554_v40  ;;  %v713_v34 = vpop.permute.xlu0 %712 }
 0x115   :  { %854 = vmatprep.mubr.f32.mxu0 %v523_v41  ;;  %939 = vmatprep.mubr.f32.mxu1 %v557_v42  ;;  %v718_v35 = vpop.permute.xlu1 %717 }
 0x118   :  { %855 = vmatmul.mubr.f32.gmra.mrb[8].mxu0 %v522_v43  ;;  %940 = vmatmul.mubr.f32.gmra.mrb[8].mxu1 %v556_v44  ;;  %v633_v36 = vpop.permute.xlu0 %632 }
 0x119   :  { %859 = vmatprep.mubr.f32.mxu0 %v525_v45  ;;  %944 = vmatprep.mubr.f32.mxu1 %v559_v46  ;;  %v638_v37 = vpop.permute.xlu1 %637 }
 0x11c   :  { %860 = vmatmul.mubr.f32.gmra.mrb[10].mxu0 %v524_v47  ;;  %945 = vmatmul.mubr.f32.gmra.mrb[10].mxu1 %v558_v48  ;;  %v723_v38 = vpop.permute.xlu0 %722 }
 0x11d   :  { %864 = vmatprep.mubr.f32.mxu0 %v527_v49  ;;  %949 = vmatprep.mubr.f32.mxu1 %v561_v50  ;;  %v728_v39 = vpop.permute.xlu1 %727 }
 0x120   :  { %865 = vmatmul.mubr.f32.gmra.mrb[12].mxu0 %v526_v51  ;;  %950 = vmatmul.mubr.f32.gmra.mrb[12].mxu1 %v560_v52  ;;  %v1899_v40 = vpop.permute.xlu0 %642 }
 0x121   :  { %869 = vmatprep.mubr.f32.mxu0 %v529_v53  ;;  %954 = vmatprep.mubr.f32.mxu1 %v563_v54  ;;  %v1901_v41 = vpop.permute.xlu1 %647 }
 0x124   :  { %870 = vmatmul.mubr.f32.gmra.mrb[14].mxu0 %v528_v55  ;;  %955 = vmatmul.mubr.f32.gmra.mrb[14].mxu1 %v562_v56  ;;  %v1905_v46 = vpop.permute.xlu0 %732 }
 0x125   :  { %874 = vmatprep.mubr.f32.mxu0 %v531_v57  ;;  %959 = vmatprep.mubr.f32.mxu1 %v565_v58  ;;  %v1907_v53 = vpop.permute.xlu1 %737 }
 0x128   :  { %875 = vmatmul.mubr.f32.gmra.mrb[16].mxu0 %v530_v59  ;;  %960 = vmatmul.mubr.f32.gmra.mrb[16].mxu1 %v564_v60 }
 0x129   :  { %879 = vmatprep.mubr.f32.mxu0 %v533_v61  ;;  %964 = vmatprep.mubr.f32.mxu1 %v567_v62 }
 0x12c   :  { %880 = vmatmul.mubr.f32.gmra.mrb[18].mxu0 %v532_v63  ;;  %965 = vmatmul.mubr.f32.gmra.mrb[18].mxu1 %v566_v0  ;;  %v653_v63 = vpop.permute.xlu0 %652 }
 0x12d   :  { %884 = vmatprep.mubr.f32.mxu0 %v535_v1  ;;  %969 = vmatprep.mubr.f32.mxu1 %v569_v3 }
 0x130   :  { %885 = vmatmul.mubr.f32.gmra.mrb[20].mxu0 %v534_v4  ;;  %970 = vmatmul.mubr.f32.gmra.mrb[20].mxu1 %v568_v5 }
 0x131   :  { %889 = vmatprep.mubr.f32.mxu0 %v537_v6  ;;  %974 = vmatprep.mubr.f32.mxu1 %v571_v7 }
 0x134   :  { %890 = vmatmul.mubr.f32.gmra.mrb[22].mxu0 %v536_v8  ;;  %975 = vmatmul.mubr.f32.gmra.mrb[22].mxu1 %v570_v10 }
 0x135   :  { %894 = vmatprep.mubr.f32.mxu0 %v539_v11  ;;  %979 = vmatprep.mubr.f32.mxu1 %v573_v12  ;;  %v658_v11 = vpop.permute.xlu1 %657 }
 0x138   :  { %895 = vmatmul.mubr.f32.gmra.mrb[24].mxu0 %v538_v13  ;;  %980 = vmatmul.mubr.f32.gmra.mrb[24].mxu1 %v572_v14 }
 0x139   :  { %899 = vmatprep.mubr.f32.mxu0 %v541_v15  ;;  %984 = vmatprep.mubr.f32.mxu1 %v575_v16 }
 0x13c   :  { %900 = vmatmul.mubr.f32.gmra.mrb[26].mxu0 %v540_v17  ;;  %985 = vmatmul.mubr.f32.gmra.mrb[26].mxu1 %v574_v18 }
 0x13d   :  { %904 = vmatprep.mubr.f32.mxu0 %v543_v19  ;;  %989 = vmatprep.mubr.f32.mxu1 %v577_v20 }
 0x140   :  { %905 = vmatmul.mubr.f32.gmra.mrb[28].mxu0 %v542_v21  ;;  %990 = vmatmul.mubr.f32.gmra.mrb[28].mxu1 %v576_v22  ;;  %v743_v21 = vpop.permute.xlu0 %742 }
 0x141   :  { %909 = vmatprep.mubr.f32.mxu0 %v545_v23  ;;  %1099 = vmatprep.mubr.f32.mxu1 %v1028_v31  ;;  %v748_v31 = vpop.permute.xlu1 %747 }
 0x144   :  { %910 = vmatmul.mubr.f32.gmra.mrb[30].mxu0 %v544_v24 }
 0x145   :  { %914 = vmatprep.mubr.f32.mxu0 %v547_v25 }
 0x148   :  { %915 = vmatmul.mubr.f32.gmra.mrb[32].mxu0 %v546_v26 }
 0x1db   :  { %v836_v42 = vpop.f32.mrb[0].mxu0  ;;  %v1903_v43 = vpop.f32.mrb[0].mxu1 }
 0x1dc   :  { %v838_v44 = vpop.f32.mrb[1].mxu0  ;;  %v923_v45 = vpop.f32.mrb[1].mxu1  ;;  %v837_v47 = vadd.f32 %v836_v42, %v613_v29 }
 0x1de   :  { %v995_v54 = vmax.f32 %v837_v47, 0.0 }
 0x1df   :  { %v841_v48 = vpop.f32.mrb[2].mxu0  ;;  %v926_v49 = vpop.f32.mrb[2].mxu1 }
 0x1e0   :  { %v842_v50 = vadd.f32 %v841_v48, %v618_v2  ;;  %v843_v51 = vpop.f32.mrb[3].mxu0  ;;  %v928_v52 = vpop.f32.mrb[3].mxu1  ;;  %v927_v56 = vadd.f32 %v926_v49, %v703_v30 }
 0x1e2   :  { %v996_v55 = vmax.f32 %v842_v50, 0.0  ;;  %v1013_v0 = vmax.f32 %v927_v56, 0.0 }
 0x1e3   :  { %v846_v57 = vpop.f32.mrb[4].mxu0  ;;  %v931_v58 = vpop.f32.mrb[4].mxu1 }
 0x1e4   :  { %v1909_v59 = vpack.c.bf16 %v996_v55, %v995_v54  ;;  %v932_v60 = vadd.f32 %v931_v58, %v708_v9  ;;  %v848_v61 = vpop.f32.mrb[5].mxu0  ;;  %v933_v62 = vpop.f32.mrb[5].mxu1  ;;  %v847_v1 = vadd.f32 %v846_v57, %v623_v32 }
 0x1e5   :  { %v668_v57 = vpop.permute.xlu1 %667 }
 0x1e6   :  { %v1014_v3 = vmax.f32 %v932_v60, 0.0  ;;  %v997_v12 = vmax.f32 %v847_v1, 0.0 }
 0x1e7   :  { %v851_v4 = vpop.f32.mrb[6].mxu0  ;;  %v936_v5 = vpop.f32.mrb[6].mxu1 }
 0x1e8   :  { %v1911_v6 = vpack.c.bf16 %v1014_v3, %v1013_v0  ;;  %v852_v7 = vadd.f32 %v851_v4, %v628_v33  ;;  %v853_v8 = vpop.f32.mrb[7].mxu0  ;;  %v938_v10 = vpop.f32.mrb[7].mxu1  ;;  %v937_v14 = vadd.f32 %v936_v5, %v713_v34 }
 0x1ea   :  { %v998_v13 = vmax.f32 %v852_v7, 0.0  ;;  %v1015_v22 = vmax.f32 %v937_v14, 0.0 }
 0x1eb   :  { %v856_v15 = vpop.f32.mrb[8].mxu0  ;;  %v941_v16 = vpop.f32.mrb[8].mxu1 }
 0x1ec   :  { %v1913_v17 = vpack.c.bf16 %v998_v13, %v997_v12  ;;  %v942_v18 = vadd.f32 %v941_v16, %v718_v35  ;;  %v858_v19 = vpop.f32.mrb[9].mxu0  ;;  %v943_v20 = vpop.f32.mrb[9].mxu1  ;;  %v857_v23 = vadd.f32 %v856_v15, %v633_v36 }
 0x1ed   :  { %v663_v36 = vpop.permute.xlu0 %662 }
 0x1ee   :  { %v1016_v24 = vmax.f32 %v942_v18, 0.0  ;;  %v999_v32 = vmax.f32 %v857_v23, 0.0 }
 0x1ef   :  { %v861_v25 = vpop.f32.mrb[10].mxu0  ;;  %v946_v26 = vpop.f32.mrb[10].mxu1 }
 0x1f0   :  { %v1915_v29 = vpack.c.bf16 %v1016_v24, %v1015_v22  ;;  %v862_v2 = vadd.f32 %v861_v25, %v638_v37  ;;  %v863_v30 = vpop.f32.mrb[11].mxu0  ;;  %v948_v9 = vpop.f32.mrb[11].mxu1  ;;  %v947_v34 = vadd.f32 %v946_v26, %v723_v38 }
 0x1f1   :  { %v753_v4 = vpop.permute.xlu0 %752 }
 0x1f2   :  { %v1000_v33 = vmax.f32 %v862_v2, 0.0  ;;  %v1017_v49 = vmax.f32 %v947_v34, 0.0 }
 0x1f3   :  { %v866_v42 = vpop.f32.mrb[12].mxu0  ;;  %v951_v44 = vpop.f32.mrb[12].mxu1 }
 0x1f4   :  { %v1917_v35 = vpack.c.bf16 %v1000_v33, %v999_v32  ;;  %v952_v45 = vadd.f32 %v951_v44, %v728_v39  ;;  %v868_v47 = vpop.f32.mrb[13].mxu0  ;;  %v953_v48 = vpop.f32.mrb[13].mxu1  ;;  %v867_v50 = vadd.f32 %v866_v42, %v1899_v40 }
 0x1f6   :  { %v1018_v51 = vmax.f32 %v952_v45, 0.0  ;;  %v1001_v58 = vmax.f32 %v867_v50, 0.0 }
 0x1f7   :  { %v871_v52 = vpop.f32.mrb[14].mxu0  ;;  %v956_v37 = vpop.f32.mrb[14].mxu1 }
 0x1f8   :  { %v1920_v54 = vpack.c.bf16 %v1018_v51, %v1017_v49  ;;  %v872_v55 = vadd.f32 %v871_v52, %v1901_v41  ;;  %v873_v56 = vpop.f32.mrb[15].mxu0  ;;  %v958_v38 = vpop.f32.mrb[15].mxu1  ;;  %v957_v39 = vadd.f32 %v956_v37, %v1905_v46 }
 0x1f9   :  { %v758_v46 = vpop.permute.xlu1 %757 }
 0x1fa   :  { %v1002_v60 = vmax.f32 %v872_v55, 0.0  ;;  %v1019_v5 = vmax.f32 %v957_v39, 0.0 }
 0x1fb   :  { %v876_v61 = vpop.f32.mrb[16].mxu0  ;;  %v961_v62 = vpop.f32.mrb[16].mxu1 }
 0x1fc   :  { %v1924_v0 = vpack.c.bf16 %v1002_v60, %v1001_v58  ;;  %v962_v40 = vadd.f32 %v961_v62, %v1907_v53  ;;  %v878_v1 = vpop.f32.mrb[17].mxu0  ;;  %v963_v3 = vpop.f32.mrb[17].mxu1  ;;  %v877_v7 = vadd.f32 %v876_v61, %v653_v63 }
 0x1fd   :  { %v673_v63 = vpop.permute.xlu0 %672  ;;  %v678_v44 = vpop.permute.xlu1 %677 }
 0x1fe   :  { %v1020_v8 = vmax.f32 %v962_v40, 0.0  ;;  %v1003_v16 = vmax.f32 %v877_v7, 0.0 }
 0x1ff   :  { %v881_v41 = vpop.f32.mrb[18].mxu0  ;;  %v966_v10 = vpop.f32.mrb[18].mxu1 }
 0x200   :  { %v1927_v12 = vpack.c.bf16 %v1020_v8, %v1019_v5  ;;  %v882_v13 = vadd.f32 %v881_v41, %v658_v11  ;;  %v883_v14 = vpop.f32.mrb[19].mxu0  ;;  %v968_v15 = vpop.f32.mrb[19].mxu1  ;;  %v967_v19 = vadd.f32 %v966_v10, %v743_v21 }
 0x201   :  { %v763_v37 = vpop.permute.xlu0 %762  ;;  %v768_v62 = vpop.permute.xlu1 %767 }
 0x202   :  { %v1004_v18 = vmax.f32 %v882_v13, 0.0  ;;  %v1021_v26 = vmax.f32 %v967_v19, 0.0 }
 0x203   :  { %v886_v20 = vpop.f32.mrb[20].mxu0  ;;  %v971_v22 = vpop.f32.mrb[20].mxu1 }
 0x204   :  { %v1929_v53 = vpack.c.bf16 %v1004_v18, %v1003_v16  ;;  %v972_v23 = vadd.f32 %v971_v22, %v748_v31  ;;  %v888_v24 = vpop.f32.mrb[21].mxu0  ;;  %v973_v25 = vpop.f32.mrb[21].mxu1  ;;  %v887_v2 = vadd.f32 %v886_v20, %v663_v36 }
 0x205   :  { %v683_v13 = vpop.permute.xlu0 %682  ;;  %v688_v16 = vpop.permute.xlu1 %687 }
 0x206   :  { %v1022_v30 = vmax.f32 %v972_v23, 0.0  ;;  %v1005_v45 = vmax.f32 %v887_v2, 0.0  ;;  %v922_v23 = vadd.f32 %v1903_v43, %v1894_v28 }
 0x207   :  { %v891_v9 = vpop.f32.mrb[22].mxu0  ;;  %v976_v32 = vpop.f32.mrb[22].mxu1 }
 0x208   :  { %v1224_v11 = vpack.c.bf16 %v1022_v30, %v1021_v26  ;;  %v892_v33 = vadd.f32 %v891_v9, %v668_v57  ;;  %v893_v34 = vpop.f32.mrb[23].mxu0  ;;  %v978_v42 = vpop.f32.mrb[23].mxu1  ;;  %v977_v47 = vadd.f32 %v976_v32, %v753_v4  ;;  %v1012_v9 = vmax.f32 %v922_v23, 0.0 }
 0x20a   :  { %v1006_v21 = vmax.f32 %v892_v33, 0.0  ;;  %v1023_v55 = vmax.f32 %v977_v47, 0.0 }
 0x20b   :  { %v896_v48 = vpop.f32.mrb[24].mxu0  ;;  %v981_v49 = vpop.f32.mrb[24].mxu1 }
 0x20c   :  { %v1226_v50 = vpack.c.bf16 %v1006_v21, %v1005_v45  ;;  %v982_v31 = vadd.f32 %v981_v49, %v758_v46  ;;  %v898_v51 = vpop.f32.mrb[25].mxu0  ;;  %v983_v52 = vpop.f32.mrb[25].mxu1  ;;  %v897_v36 = vadd.f32 %v896_v48, %v673_v63 }
 0x20e   :  { %v1024_v56 = vmax.f32 %v982_v31, 0.0  ;;  %v1007_v40 = vmax.f32 %v897_v36, 0.0 }
 0x20f   :  { %v901_v38 = vpop.f32.mrb[26].mxu0  ;;  %v986_v58 = vpop.f32.mrb[26].mxu1 }
 0x210   :  { %v1228_v60 = vpack.c.bf16 %v1024_v56, %v1023_v55  ;;  %v902_v57 = vadd.f32 %v901_v38, %v678_v44  ;;  %v903_v39 = vpop.f32.mrb[27].mxu0  ;;  %v988_v61 = vpop.f32.mrb[27].mxu1  ;;  %v987_v3 = vadd.f32 %v986_v58, %v763_v37 }
 0x212   :  { %v1008_v1 = vmax.f32 %v902_v57, 0.0  ;;  %v1025_v14 = vmax.f32 %v987_v3, 0.0 }
 0x213   :  { %v906_v4 = vpop.f32.mrb[28].mxu0  ;;  %v991_v5 = vpop.f32.mrb[28].mxu1 }
 0x214   :  { %v1230_v7 = vpack.c.bf16 %v1008_v1, %v1007_v40  ;;  %v992_v8 = vadd.f32 %v991_v5, %v768_v62  ;;  %v908_v41 = vpop.f32.mrb[29].mxu0  ;;  %v993_v10 = vpop.f32.mrb[29].mxu1  ;;  %v907_v15 = vadd.f32 %v906_v4, %v683_v13 }
 0x216   :  { %v1026_v46 = vmax.f32 %v992_v8, 0.0  ;;  %v1009_v24 = vmax.f32 %v907_v15, 0.0 }
 0x217   :  { %v911_v18 = vpop.f32.mrb[30].mxu0 }
 0x218   :  { %v1232_v19 = vpack.c.bf16 %v1026_v46, %v1025_v14  ;;  %v912_v20 = vadd.f32 %v911_v18, %v688_v16  ;;  %v913_v22 = vpop.f32.mrb[31].mxu0 }
 0x21a   :  { %v1010_v25 = vmax.f32 %v912_v20, 0.0 }
 0x21b   :  { %v916_v63 = vpop.f32.mrb[32].mxu0 }
 0x21c   :  { %v1234_v26 = vpack.c.bf16 %v1010_v25, %v1009_v24  ;;  %v917_v2 = vadd.f32 %v916_v63, %v1892_v27  ;;  %v918_v30 = vpop.f32.mrb[33].mxu0  ;;  %v1027_v27 = vld [vmem:[%s1963_s5] sm:$0xff] }
 0x21e   :  { %v1011_v32 = vmax.f32 %v917_v2, 0.0 }
 0x220   :  { %v1204_v33 = vpack.c.bf16 %v1012_v9, %v1011_v32 }
 0x222   :  { %1205 = vmatprep.subr.bf16.mxu1 %v1204_v33 }
 0x223   :  { %1207 = vmatpush3.bf16.msra.mxu1 %v1909_v59 }
 0x224   :  { %1209 = vmatprep.subr.bf16.mxu1 %v1911_v6  ;;  %v1033_v6 = vpop.permute.xlu0 %1032 }
 0x227   :  { %1211 = vmatpush3.bf16.msra.mxu1 %v1913_v17 }
 0x228   :  { %1213 = vmatprep.subr.bf16.mxu1 %v1915_v29 }
 0x22b   :  { %1215 = vmatpush3.bf16.msra.mxu1 %v1917_v35 }
 0x22c   :  { %1217 = vmatprep.subr.bf16.mxu1 %v1920_v54 }
 0x22f   :  { %1219 = vmatpush3.bf16.msra.mxu1 %v1924_v0 }
 0x230   :  { %1221 = vmatprep.subr.bf16.mxu1 %v1927_v12 }
 0x233   :  { %1223 = vmatpush3.bf16.msra.mxu1 %v1929_v53 }
 0x234   :  { %1225 = vmatprep.subr.bf16.mxu1 %v1224_v11 }
 0x237   :  { %1227 = vmatpush3.bf16.msra.mxu1 %v1226_v50 }
 0x238   :  { %1229 = vmatprep.subr.bf16.mxu1 %v1228_v60 }
 0x23b   :  { %1231 = vmatpush3.bf16.msra.mxu1 %v1230_v7 }
 0x23c   :  { %1233 = vmatprep.subr.bf16.mxu1 %v1232_v19 }
 0x23f   :  { %1235 = vmatpush3.bf16.msra.mxu1 %v1234_v26 }
 0x242   :  { %1100 = vmatmul.mubr.f32.vlgmr.msra.gmra.mrb[30].mxu1 %v1027_v27 }
 0x315   :  { %v1153_v28 = vpop.f32.mrb[30].mxu1 }
 0x316   :  { %v1154_v43 = vpop.f32.mrb[31].mxu1 }
 0x317   :  { %v1155_v59 = vadd.f32 %v1154_v43, %v1153_v28 }
 0x319   :  { %v1102_v17 = vadd.f32 %v1155_v59, %v1033_v6 }
 0x31b   :  { %1105 = vst [vmem:[#allocation2] sm:$0xff] %v1102_v17 }
 0x31c   :  { %1284 = shalt.err (!%p1281_p4)
}
 0x31d   :  { %s1285_s5 = scalar_lea.hbm %s1965_s7, 128 }
 0x31e   :  { %p1286_p5 = scmp.ne.s32.totalorder %s1965_s7, %s1285_s5  ;;  %p1289_p6 = scmp.lt.u32.totalorder %s1285_s5, %s1965_s7 }
 0x320   :  { %p1291_p7 = pnand %p1289_p6, %p1286_p5 }
 0x322   :  { %1294 = shalt.err (!%p1291_p7)
}
 0x323   :  { %1115 = dma.vmem_to_hbm [thread:$0]  %s1113_s0, 128, %s1965_s7, [#allocation3]  }
 0x324   :  { %1295 = dma.done.wait [#allocation3], 128  }
 0x325   :  { %1296 = vsyncadd [#allocation3], 4294967168 }
 0x326   :  { %1119 = vsyncpa [#allocation3], 1 }

</bundles_post_ra>
